<compile_context>
chip_gen: v6e
topology: v6e:2x2x1
jax: 0.10.0
libtpu: 0.0.40
codegen_flags: <defaults>
</compile_context>

<pallas_src>
import functools

import numpy as np
import jax
import jax.numpy as jnp
from jax.experimental import pallas as pl
from jax.experimental.pallas import tpu as pltpu

D_FEAT = 19               # features per object slot
NP_PRED = 8               # per-object predicate-partial columns in W_big (0..3 used, 4..7 zero)
ZERO_PCOL = NP_PRED - 1   # a guaranteed-zero partial column (used to "add nothing")


# ----------------------------------------------------------------------------
# Fused Pallas kernel
# ----------------------------------------------------------------------------
def _fused_valuation_kernel(table_ref, zs_ref, w_ref, aux_ref, out_ref, *, n_atoms):
    """Evaluate n_atoms ground atoms for one scene batch.

    table_ref: SMEM int32 (3*n_atoms,) scalar-prefetch: [sel_zs, sel_p1, sel_p2] per atom
               (flat column indices into zs / the predicate-partial slab).
    zs_ref:    VMEM f32 (B, NO*19)      whole object-centric representation, loaded once.
    w_ref:     VMEM f32 (NO*19, NO*8)   block-diagonal stacked learned-predicate weights.
    aux_ref:   SMEM f32 (2*n_atoms,)    [blend(1=attribute, 0=learned), bias] per atom.
    out_ref:   VMEM f32 (B, n_atoms)    lane-dense packed probabilities.
    """
    zs = zs_ref[...]                                                     # (B, NO*D)
    # One MXU matmul: per-object partial logits for every learned predicate.
    pred = jnp.dot(zs, w_ref[...], preferred_element_type=jnp.float32)   # (B, NO*NP)

    B = zs.shape[0]
    zs_lane = jax.lax.broadcasted_iota(jnp.int32, zs.shape, 1)
    pred_lane = jax.lax.broadcasted_iota(jnp.int32, pred.shape, 1)
    out_lane = jax.lax.broadcasted_iota(jnp.int32, (B, n_atoms), 1)

    acc = jnp.zeros((B, n_atoms), jnp.float32)
    for a in range(n_atoms):                    # static unroll; selectors are dynamic (SMEM)
        sel_zs = table_ref[3 * a + 0]
        sel_p1 = table_ref[3 * a + 1]
        sel_p2 = table_ref[3 * a + 2]
        blend = aux_ref[2 * a + 0]
        bias = aux_ref[2 * a + 1]

        # Attribute / 'in' valuation: direct column select of zs (no one-hot anywhere).
        attr_val = jnp.sum(jnp.where(zs_lane == sel_zs, zs, 0.0), axis=1, keepdims=True)
        # Learned predicate: sum of two per-object partial logits + bias, then sigmoid.
        p1 = jnp.sum(jnp.where(pred_lane == sel_p1, pred, 0.0), axis=1, keepdims=True)
        p2 = jnp.sum(jnp.where(pred_lane == sel_p2, pred, 0.0), axis=1, keepdims=True)
        learned_val = jax.nn.sigmoid(p1 + p2 + bias)

        val = blend * attr_val + (1.0 - blend) * learned_val             # (B, 1)
        acc = acc + val * (out_lane == a).astype(jnp.float32)
    out_ref[...] = acc                                                   # one lane-dense store


@functools.lru_cache(maxsize=None)
def _get_fused_call(B, n_obj, n_atoms):
    nod = n_obj * D_FEAT
    nonp = n_obj * NP_PRED
    kernel = functools.partial(_fused_valuation_kernel, n_atoms=n_atoms)
    return pl.pallas_call(
        kernel,
        out_shape=jax.ShapeDtypeStruct((B, n_atoms), jnp.float32),
        grid_spec=pltpu.PrefetchScalarGridSpec(
            num_scalar_prefetch=1,                                     # int32 selector table
            grid=(1,),                                                 # all atoms in one step
            in_specs=[
                pl.BlockSpec((B, nod), lambda i, tbl: (0, 0)),         # zs, whole & contiguous
                pl.BlockSpec((nod, nonp), lambda i, tbl: (0, 0)),      # stacked weights
                pl.BlockSpec(memory_space=pltpu.MemorySpace.SMEM),     # per-atom blend/bias
            ],
            out_specs=pl.BlockSpec((B, n_atoms), lambda i, tbl: (0, 0)),
        ),
        compiler_params=pltpu.CompilerParams(
            dimension_semantics=("arbitrary",),
        ),
    )


# ----------------------------------------------------------------------------
# Minimal symbolic machinery (Language / Term / Atom), mirroring the interface
# ----------------------------------------------------------------------------
class DType:
    def __init__(self, name):
        self.name = name


class Term:
    def __init__(self, name, dtype):
        self.name = name
        self.dtype = dtype


class Predicate:
    def __init__(self, name):
        self.name = name


class Atom:
    def __init__(self, pred, terms):
        self.pred = pred
        self.terms = list(terms)


class Language:
    """term_index returns the index of a term within its dtype group."""

    def __init__(self, consts):
        self.consts = list(consts)
        self._by_dtype = {}
        for t in self.consts:
            self._by_dtype.setdefault(t.dtype.name, []).append(t.name)

    def term_index(self, term):
        return self._by_dtype[term.dtype.name].index(term.name)


# ----------------------------------------------------------------------------
# The module
# ----------------------------------------------------------------------------
class SlotAttentionValuationModule:
    _ATTR_BASE = {'color': 11, 'shape': 4, 'size': 7, 'material': 9}

    def __init__(self, lang, pretrained=False, seed=0):
        self.lang = lang
        self.colors = ['cyan', 'blue', 'yellow', 'purple', 'red', 'green', 'gray', 'brown']
        self.shapes = ['sphere', 'cube', 'cylinder']
        self.sizes = ['large', 'small']
        self.materials = ['rubber', 'metal']
        self.sides = ['left', 'right']
        self._init_params(pretrained, seed)
        self.layers, self.vfs = self._init_reference_vfs()

    # ------------------------- parameters / weight packing -------------------------
    def _init_params(self, pretrained, seed):
        # TODO(synk): original code loads pretrained .pt state dicts for the neural
        # predicates; here the linear weights are initialized deterministically instead.
        k1, k2, k3 = jax.random.split(jax.random.PRNGKey(seed), 3)
        self.w_right = np.asarray(0.1 * jax.random.normal(k1, (D_FEAT,), jnp.float32))
        self.w_left = np.asarray(0.1 * jax.random.normal(k2, (D_FEAT,), jnp.float32))
        self.w_front = np.asarray(0.1 * jax.random.normal(k3, (6,), jnp.float32))
        self.b_right, self.b_left, self.b_front = 0.01, -0.01, 0.0

        # Per-object stacked predicate weights: col 0 = rightside, 1 = leftside,
        # 2 = front (first object's xyz), 3 = front (second object's xyz), 4..7 = zero.
        w_per = np.zeros((D_FEAT, NP_PRED), np.float32)
        w_per[:, 0] = self.w_right
        w_per[:, 1] = self.w_left
        w_per[1:4, 2] = self.w_front[:3]
        w_per[1:4, 3] = self.w_front[3:]
        self._w_per = w_per
        self._w_big_cache = {}

    def _w_big(self, n_obj):
        if n_obj not in self._w_big_cache:
            w = np.zeros((n_obj * D_FEAT, n_obj * NP_PRED), np.float32)
            for o in range(n_obj):
                w[o * D_FEAT:(o + 1) * D_FEAT, o * NP_PRED:(o + 1) * NP_PRED] = self._w_per
            self._w_big_cache[n_obj] = jnp.asarray(w)
        return self._w_big_cache[n_obj]

    # ------------------------- atom -> selector row -------------------------
    def _attr_list(self, name):
        return {'color': self.colors, 'shape': self.shapes,
                'size': self.sizes, 'material': self.materials}[name]

    def _atom_row(self, atom):
        """Returns (sel_zs, sel_p1, sel_p2, blend, bias) for one ground atom."""
        name = atom.pred.name
        if name in self._ATTR_BASE:
            obj = self.lang.term_index(atom.terms[0])
            col = self._ATTR_BASE[name] + self._attr_list(name).index(atom.terms[1].name)
            return (obj * D_FEAT + col, ZERO_PCOL, ZERO_PCOL, 1.0, 0.0)
        if name == 'in':
            obj = self.lang.term_index(atom.terms[0])
            return (obj * D_FEAT + 0, ZERO_PCOL, ZERO_PCOL, 1.0, 0.0)   # objectness
        if name == 'rightside':
            obj = self.lang.term_index(atom.terms[0])
            return (0, obj * NP_PRED + 0, obj * NP_PRED + ZERO_PCOL, 0.0, self.b_right)
        if name == 'leftside':
            obj = self.lang.term_index(atom.terms[0])
            return (0, obj * NP_PRED + 1, obj * NP_PRED + ZERO_PCOL, 0.0, self.b_left)
        if name == 'front':
            o1 = self.lang.term_index(atom.terms[0])
            o2 = self.lang.term_index(atom.terms[1])
            return (0, o1 * NP_PRED + 2, o2 * NP_PRED + 3, 0.0, self.b_front)
        raise ValueError('Invalid predicate: ' + name)

    # ------------------------- fused Pallas forward -------------------------
    def forward_atoms(self, zs, atoms):
        """Fused Pallas evaluation of a batch of ground atoms. Returns (B, n_atoms)."""
        B, n_obj, d = zs.shape
        assert d == D_FEAT, f"expected {D_FEAT} features per object, got {d}"
        rows = [self._atom_row(a) for a in atoms]
        table = jnp.asarray(np.asarray([r[:3] for r in rows], np.int32).reshape(-1))
        aux = jnp.asarray(np.asarray([r[3:] for r in rows], np.float32).reshape(-1))
        zs_flat = zs.reshape(B, n_obj * D_FEAT).astype(jnp.float32)
        call = _get_fused_call(B, n_obj, len(atoms))
        return call(table, zs_flat, self._w_big(n_obj), aux)

    def forward(self, zs, atom):
        """Original per-atom API: probability of one ground atom, shape (B,)."""
        return self.forward_atoms(zs, (atom,))[:, 0]

    # ------------------------- pure-jnp reference path (original semantics) -------------------------
    def _init_reference_vfs(self):
        wr, wl, wf = jnp.asarray(self.w_right), jnp.asarray(self.w_left), jnp.asarray(self.w_front)
        br, bl, bf = self.b_right, self.b_left, self.b_front
        vfs = {
            'color': lambda z, a: jnp.sum(a * z[:, 11:19], axis=1),
            'shape': lambda z, a: jnp.sum(a * z[:, 4:7], axis=1),
            'in': lambda z, x: z[:, 0],
            'size': lambda z, a: jnp.sum(a * z[:, 7:9], axis=1),
            'material': lambda z, a: jnp.sum(a * z[:, 9:11], axis=1),
            'rightside': lambda z: jax.nn.sigmoid(z @ wr + br),
            'leftside': lambda z: jax.nn.sigmoid(z @ wl + bl),
            'front': lambda z1, z2: jax.nn.sigmoid(
                jnp.concatenate([z1[:, 1:4], z2[:, 1:4]], axis=1) @ wf + bf),
        }
        layers = [vfs[k] for k in ['color', 'shape', 'in', 'size', 'material',
                                   'rightside', 'leftside', 'front']]
        return layers, vfs

    def reference_forward(self, zs, atom):
        """Mirrors the original PyTorch forward exactly (one-hots, host slicing) in plain jnp."""
        args = [self.ground_to_tensor(term, zs) for term in atom.terms]
        return self.vfs[atom.pred.name](*args)

    def ground_to_tensor(self, term, zs):
        term_index = self.lang.term_index(term)
        if term.dtype.name == 'object':
            return zs[:, term_index]
        elif term.dtype.name == 'image':
            return None
        else:
            return self.term_to_onehot(term, batch_size=zs.shape[0])

    def term_to_onehot(self, term, batch_size):
        if term.dtype.name == 'color':
            return self.to_onehot_batch(self.colors.index(term.name), len(self.colors), batch_size)
        elif term.dtype.name == 'shape':
            return self.to_onehot_batch(self.shapes.index(term.name), len(self.shapes), batch_size)
        elif term.dtype.name == 'material':
            return self.to_onehot_batch(self.materials.index(term.name), len(self.materials), batch_size)
        elif term.dtype.name == 'size':
            return self.to_onehot_batch(self.sizes.index(term.name), len(self.sizes), batch_size)
        elif term.dtype.name == 'side':
            return self.to_onehot_batch(self.sides.index(term.name), len(self.sides), batch_size)
        else:
            raise ValueError('Invalid term: ' + str(term.name))

    def to_onehot_batch(self, i, length, batch_size):
        onehot = jnp.zeros((batch_size, length), jnp.float32)
        return onehot.at[:, i].set(1.0)


# ----------------------------------------------------------------------------
# Demo / smoke test
# ----------------------------------------------------------------------------
if __name__ == "__main__":
    B, N_OBJ = 2, 4

    obj_t = DType('object')
    img_t = DType('image')
    col_t = DType('color')
    shp_t = DType('shape')
    siz_t = DType('size')
    mat_t = DType('material')

    objects = [Term(f'obj{i}', obj_t) for i in range(N_OBJ)]
    images = [Term('img', img_t)]
    color_terms = [Term(c, col_t) for c in
                   ['cyan', 'blue', 'yellow', 'purple', 'red', 'green', 'gray', 'brown']]
    shape_terms = [Term(s, shp_t) for s in ['sphere', 'cube', 'cylinder']]
    size_terms = [Term(s, siz_t) for s in ['large', 'small']]
    material_terms = [Term(m, mat_t) for m in ['rubber', 'metal']]

    lang = Language(objects + images + color_terms + shape_terms + size_terms + material_terms)
    vm = SlotAttentionValuationModule(lang, pretrained=False, seed=0)

    key = jax.random.PRNGKey(0)
    zs = jax.random.uniform(key, (B, N_OBJ, D_FEAT), dtype=jnp.float32)

    atoms = [
        Atom(Predicate('color'), [objects[1], color_terms[4]]),       # color(obj1, red)
        Atom(Predicate('shape'), [objects[0], shape_terms[0]]),       # shape(obj0, sphere)
        Atom(Predicate('size'), [objects[2], size_terms[0]]),         # size(obj2, large)
        Atom(Predicate('material'), [objects[3], material_terms[1]]), # material(obj3, metal)
        Atom(Predicate('in'), [objects[0], images[0]]),               # in(obj0, img)
        Atom(Predicate('rightside'), [objects[1]]),                   # rightside(obj1)
        Atom(Predicate('leftside'), [objects[2]]),                    # leftside(obj2)
        Atom(Predicate('front'), [objects[0], objects[1]]),           # front(obj0, obj1)
    ]

    # One fused kernel call evaluates all atoms.
    out = jax.block_until_ready(vm.forward_atoms(zs, atoms))
    assert out.shape == (B, len(atoms)), f"unexpected shape {out.shape}"
    assert bool(jnp.all(jnp.isfinite(out))), "non-finite output"

    # Validate every atom against the plain-JAX reference (original PyTorch semantics).
    for i, atom in enumerate(atoms):
        ref = vm.reference_forward(zs, atom)
        assert ref.shape == (B,)
        assert bool(jnp.allclose(out[:, i], ref, atol=1e-5, rtol=1e-5)), \
            f"mismatch for {atom.pred.name}: {out[:, i]} vs {ref}"

    # Single-atom API (same semantics as the original forward) also uses the fused kernel.
    single = jax.block_until_ready(vm.forward(zs, atoms[0]))
    assert single.shape == (B,)
    assert bool(jnp.allclose(single, out[:, 0], atol=1e-6)), "single-atom path mismatch"

    print("KERNEL_OK")
</pallas_src>

<mosaic_0001>
module attributes {stable_mosaic.version = 11 : i64} {
  func.func @_fused_valuation_kernel(%arg0: i32, %arg1: memref<24xi32, #tpu.memory_space<smem>>, %arg2: memref<2x76xf32, #tpu.memory_space<vmem>>, %arg3: memref<76x32xf32, #tpu.memory_space<vmem>>, %arg4: memref<16xf32, #tpu.memory_space<smem>>, %arg5: memref<2x8xf32, #tpu.memory_space<vmem>>) attributes {dimension_semantics = [#tpu.dimension_semantics<arbitrary>], iteration_bounds = array<i64: 1>, scalar_prefetch = 1 : i64, scratch_operands = 0 : i64, tpu.core_type = #tpu.core_type<tc>, window_params = [{pipeline_mode = #tpu.pipeline_mode<synchronous>, transform_indices = @transform_0, window_bounds = array<i64: 2, 76>}, {pipeline_mode = #tpu.pipeline_mode<synchronous>, transform_indices = @transform_1, window_bounds = array<i64: 76, 32>}, {transform_indices = @transform_2, window_bounds = array<i64: 16>}, {pipeline_mode = #tpu.pipeline_mode<synchronous>, transform_indices = @transform_3, window_bounds = array<i64: 2, 8>}]} {
    %c0 = arith.constant 0 : index
    %c0_0 = arith.constant 0 : index
    %0 = vector.load %arg2[%c0, %c0_0] : memref<2x76xf32, #tpu.memory_space<vmem>>, vector<2x76xf32>
    %c0_1 = arith.constant 0 : index
    %c0_2 = arith.constant 0 : index
    %1 = vector.load %arg3[%c0_1, %c0_2] : memref<76x32xf32, #tpu.memory_space<vmem>>, vector<76x32xf32>
    %cst = arith.constant dense<0.000000e+00> : vector<2x32xf32>
    %2 = tpu.matmul %0, %1, %cst {dimension_numbers = #tpu.dot_dimension_numbers<[1], [0], [0], [1], [0, 0, 1, 1], [], []>} : vector<2x76xf32>, vector<76x32xf32>, vector<2x32xf32> -> vector<2x32xf32>
    %3 = tpu.iota {dimensions = array<i32: 1>} : vector<2x76xi32>
    %4 = tpu.iota {dimensions = array<i32: 1>} : vector<2x32xi32>
    %5 = tpu.iota {dimensions = array<i32: 1>} : vector<2x8xi32>
    %cst_3 = arith.constant 0.000000e+00 : f32
    %6 = vector.broadcast %cst_3 : f32 to vector<2x8xf32>
    %c0_4 = arith.constant 0 : index
    %7 = memref.load %arg1[%c0_4] : memref<24xi32, #tpu.memory_space<smem>>
    %c1 = arith.constant 1 : index
    %8 = memref.load %arg1[%c1] : memref<24xi32, #tpu.memory_space<smem>>
    %c2 = arith.constant 2 : index
    %9 = memref.load %arg1[%c2] : memref<24xi32, #tpu.memory_space<smem>>
    %c0_5 = arith.constant 0 : index
    %10 = memref.load %arg4[%c0_5] : memref<16xf32, #tpu.memory_space<smem>>
    %c1_6 = arith.constant 1 : index
    %11 = memref.load %arg4[%c1_6] : memref<16xf32, #tpu.memory_space<smem>>
    %12 = vector.broadcast %7 : i32 to vector<2x76xi32>
    %13 = arith.cmpi eq, %3, %12 : vector<2x76xi32>
    %cst_7 = arith.constant 0.000000e+00 : f32
    %14 = vector.broadcast %cst_7 : f32 to vector<2x76xf32>
    %15 = arith.select %13, %0, %14 : vector<2x76xi1>, vector<2x76xf32>
    %cst_8 = arith.constant dense<0.000000e+00> : vector<2xf32>
    %16 = vector.multi_reduction <add>, %15, %cst_8 [1] : vector<2x76xf32> to vector<2xf32>
    %17 = vector.shape_cast %16 : vector<2xf32> to vector<2x1xf32>
    %18 = vector.broadcast %8 : i32 to vector<2x32xi32>
    %19 = arith.cmpi eq, %4, %18 : vector<2x32xi32>
    %cst_9 = arith.constant 0.000000e+00 : f32
    %20 = vector.broadcast %cst_9 : f32 to vector<2x32xf32>
    %21 = arith.select %19, %2, %20 : vector<2x32xi1>, vector<2x32xf32>
    %cst_10 = arith.constant dense<0.000000e+00> : vector<2xf32>
    %22 = vector.multi_reduction <add>, %21, %cst_10 [1] : vector<2x32xf32> to vector<2xf32>
    %23 = vector.shape_cast %22 : vector<2xf32> to vector<2x1xf32>
    %24 = vector.broadcast %9 : i32 to vector<2x32xi32>
    %25 = arith.cmpi eq, %4, %24 : vector<2x32xi32>
    %cst_11 = arith.constant 0.000000e+00 : f32
    %26 = vector.broadcast %cst_11 : f32 to vector<2x32xf32>
    %27 = arith.select %25, %2, %26 : vector<2x32xi1>, vector<2x32xf32>
    %cst_12 = arith.constant dense<0.000000e+00> : vector<2xf32>
    %28 = vector.multi_reduction <add>, %27, %cst_12 [1] : vector<2x32xf32> to vector<2xf32>
    %29 = vector.shape_cast %28 : vector<2xf32> to vector<2x1xf32>
    %30 = arith.addf %23, %29 : vector<2x1xf32>
    %31 = vector.broadcast %11 : f32 to vector<2x1xf32>
    %32 = arith.addf %30, %31 : vector<2x1xf32>
    %33 = arith.negf %32 : vector<2x1xf32>
    %34 = math.exp %33 : vector<2x1xf32>
    %cst_13 = arith.constant 1.000000e+00 : f32
    %35 = vector.broadcast %cst_13 : f32 to vector<2x1xf32>
    %36 = arith.addf %35, %34 : vector<2x1xf32>
    %37 = arith.divf %35, %36 : vector<2x1xf32>
    %38 = vector.broadcast %10 : f32 to vector<2x1xf32>
    %39 = arith.mulf %38, %17 : vector<2x1xf32>
    %cst_14 = arith.constant 1.000000e+00 : f32
    %40 = arith.subf %cst_14, %10 : f32
    %41 = vector.broadcast %40 : f32 to vector<2x1xf32>
    %42 = arith.mulf %41, %37 : vector<2x1xf32>
    %43 = arith.addf %39, %42 : vector<2x1xf32>
    %c0_i32 = arith.constant 0 : i32
    %44 = vector.broadcast %c0_i32 : i32 to vector<2x8xi32>
    %45 = arith.cmpi eq, %5, %44 : vector<2x8xi32>
    %46 = arith.extui %45 : vector<2x8xi1> to vector<2x8xi32>
    %47 = arith.sitofp %46 : vector<2x8xi32> to vector<2x8xf32>
    %48 = vector.broadcast %43 : vector<2x1xf32> to vector<2x8xf32>
    %49 = arith.mulf %48, %47 : vector<2x8xf32>
    %50 = arith.addf %6, %49 : vector<2x8xf32>
    %c3 = arith.constant 3 : index
    %51 = memref.load %arg1[%c3] : memref<24xi32, #tpu.memory_space<smem>>
    %c4 = arith.constant 4 : index
    %52 = memref.load %arg1[%c4] : memref<24xi32, #tpu.memory_space<smem>>
    %c5 = arith.constant 5 : index
    %53 = memref.load %arg1[%c5] : memref<24xi32, #tpu.memory_space<smem>>
    %c2_15 = arith.constant 2 : index
    %54 = memref.load %arg4[%c2_15] : memref<16xf32, #tpu.memory_space<smem>>
    %c3_16 = arith.constant 3 : index
    %55 = memref.load %arg4[%c3_16] : memref<16xf32, #tpu.memory_space<smem>>
    %56 = vector.broadcast %51 : i32 to vector<2x76xi32>
    %57 = arith.cmpi eq, %3, %56 : vector<2x76xi32>
    %cst_17 = arith.constant 0.000000e+00 : f32
    %58 = vector.broadcast %cst_17 : f32 to vector<2x76xf32>
    %59 = arith.select %57, %0, %58 : vector<2x76xi1>, vector<2x76xf32>
    %cst_18 = arith.constant dense<0.000000e+00> : vector<2xf32>
    %60 = vector.multi_reduction <add>, %59, %cst_18 [1] : vector<2x76xf32> to vector<2xf32>
    %61 = vector.shape_cast %60 : vector<2xf32> to vector<2x1xf32>
    %62 = vector.broadcast %52 : i32 to vector<2x32xi32>
    %63 = arith.cmpi eq, %4, %62 : vector<2x32xi32>
    %cst_19 = arith.constant 0.000000e+00 : f32
    %64 = vector.broadcast %cst_19 : f32 to vector<2x32xf32>
    %65 = arith.select %63, %2, %64 : vector<2x32xi1>, vector<2x32xf32>
    %cst_20 = arith.constant dense<0.000000e+00> : vector<2xf32>
    %66 = vector.multi_reduction <add>, %65, %cst_20 [1] : vector<2x32xf32> to vector<2xf32>
    %67 = vector.shape_cast %66 : vector<2xf32> to vector<2x1xf32>
    %68 = vector.broadcast %53 : i32 to vector<2x32xi32>
    %69 = arith.cmpi eq, %4, %68 : vector<2x32xi32>
    %cst_21 = arith.constant 0.000000e+00 : f32
    %70 = vector.broadcast %cst_21 : f32 to vector<2x32xf32>
    %71 = arith.select %69, %2, %70 : vector<2x32xi1>, vector<2x32xf32>
    %cst_22 = arith.constant dense<0.000000e+00> : vector<2xf32>
    %72 = vector.multi_reduction <add>, %71, %cst_22 [1] : vector<2x32xf32> to vector<2xf32>
    %73 = vector.shape_cast %72 : vector<2xf32> to vector<2x1xf32>
    %74 = arith.addf %67, %73 : vector<2x1xf32>
    %75 = vector.broadcast %55 : f32 to vector<2x1xf32>
    %76 = arith.addf %74, %75 : vector<2x1xf32>
    %77 = arith.negf %76 : vector<2x1xf32>
    %78 = math.exp %77 : vector<2x1xf32>
    %cst_23 = arith.constant 1.000000e+00 : f32
    %79 = vector.broadcast %cst_23 : f32 to vector<2x1xf32>
    %80 = arith.addf %79, %78 : vector<2x1xf32>
    %81 = arith.divf %79, %80 : vector<2x1xf32>
    %82 = vector.broadcast %54 : f32 to vector<2x1xf32>
    %83 = arith.mulf %82, %61 : vector<2x1xf32>
    %cst_24 = arith.constant 1.000000e+00 : f32
    %84 = arith.subf %cst_24, %54 : f32
    %85 = vector.broadcast %84 : f32 to vector<2x1xf32>
    %86 = arith.mulf %85, %81 : vector<2x1xf32>
    %87 = arith.addf %83, %86 : vector<2x1xf32>
    %c1_i32 = arith.constant 1 : i32
    %88 = vector.broadcast %c1_i32 : i32 to vector<2x8xi32>
    %89 = arith.cmpi eq, %5, %88 : vector<2x8xi32>
    %90 = arith.extui %89 : vector<2x8xi1> to vector<2x8xi32>
    %91 = arith.sitofp %90 : vector<2x8xi32> to vector<2x8xf32>
    %92 = vector.broadcast %87 : vector<2x1xf32> to vector<2x8xf32>
    %93 = arith.mulf %92, %91 : vector<2x8xf32>
    %94 = arith.addf %50, %93 : vector<2x8xf32>
    %c6 = arith.constant 6 : index
    %95 = memref.load %arg1[%c6] : memref<24xi32, #tpu.memory_space<smem>>
    %c7 = arith.constant 7 : index
    %96 = memref.load %arg1[%c7] : memref<24xi32, #tpu.memory_space<smem>>
    %c8 = arith.constant 8 : index
    %97 = memref.load %arg1[%c8] : memref<24xi32, #tpu.memory_space<smem>>
    %c4_25 = arith.constant 4 : index
    %98 = memref.load %arg4[%c4_25] : memref<16xf32, #tpu.memory_space<smem>>
    %c5_26 = arith.constant 5 : index
    %99 = memref.load %arg4[%c5_26] : memref<16xf32, #tpu.memory_space<smem>>
    %100 = vector.broadcast %95 : i32 to vector<2x76xi32>
    %101 = arith.cmpi eq, %3, %100 : vector<2x76xi32>
    %cst_27 = arith.constant 0.000000e+00 : f32
    %102 = vector.broadcast %cst_27 : f32 to vector<2x76xf32>
    %103 = arith.select %101, %0, %102 : vector<2x76xi1>, vector<2x76xf32>
    %cst_28 = arith.constant dense<0.000000e+00> : vector<2xf32>
    %104 = vector.multi_reduction <add>, %103, %cst_28 [1] : vector<2x76xf32> to vector<2xf32>
    %105 = vector.shape_cast %104 : vector<2xf32> to vector<2x1xf32>
    %106 = vector.broadcast %96 : i32 to vector<2x32xi32>
    %107 = arith.cmpi eq, %4, %106 : vector<2x32xi32>
    %cst_29 = arith.constant 0.000000e+00 : f32
    %108 = vector.broadcast %cst_29 : f32 to vector<2x32xf32>
    %109 = arith.select %107, %2, %108 : vector<2x32xi1>, vector<2x32xf32>
    %cst_30 = arith.constant dense<0.000000e+00> : vector<2xf32>
    %110 = vector.multi_reduction <add>, %109, %cst_30 [1] : vector<2x32xf32> to vector<2xf32>
    %111 = vector.shape_cast %110 : vector<2xf32> to vector<2x1xf32>
    %112 = vector.broadcast %97 : i32 to vector<2x32xi32>
    %113 = arith.cmpi eq, %4, %112 : vector<2x32xi32>
    %cst_31 = arith.constant 0.000000e+00 : f32
    %114 = vector.broadcast %cst_31 : f32 to vector<2x32xf32>
    %115 = arith.select %113, %2, %114 : vector<2x32xi1>, vector<2x32xf32>
    %cst_32 = arith.constant dense<0.000000e+00> : vector<2xf32>
    %116 = vector.multi_reduction <add>, %115, %cst_32 [1] : vector<2x32xf32> to vector<2xf32>
    %117 = vector.shape_cast %116 : vector<2xf32> to vector<2x1xf32>
    %118 = arith.addf %111, %117 : vector<2x1xf32>
    %119 = vector.broadcast %99 : f32 to vector<2x1xf32>
    %120 = arith.addf %118, %119 : vector<2x1xf32>
    %121 = arith.negf %120 : vector<2x1xf32>
    %122 = math.exp %121 : vector<2x1xf32>
    %cst_33 = arith.constant 1.000000e+00 : f32
    %123 = vector.broadcast %cst_33 : f32 to vector<2x1xf32>
    %124 = arith.addf %123, %122 : vector<2x1xf32>
    %125 = arith.divf %123, %124 : vector<2x1xf32>
    %126 = vector.broadcast %98 : f32 to vector<2x1xf32>
    %127 = arith.mulf %126, %105 : vector<2x1xf32>
    %cst_34 = arith.constant 1.000000e+00 : f32
    %128 = arith.subf %cst_34, %98 : f32
    %129 = vector.broadcast %128 : f32 to vector<2x1xf32>
    %130 = arith.mulf %129, %125 : vector<2x1xf32>
    %131 = arith.addf %127, %130 : vector<2x1xf32>
    %c2_i32 = arith.constant 2 : i32
    %132 = vector.broadcast %c2_i32 : i32 to vector<2x8xi32>
    %133 = arith.cmpi eq, %5, %132 : vector<2x8xi32>
    %134 = arith.extui %133 : vector<2x8xi1> to vector<2x8xi32>
    %135 = arith.sitofp %134 : vector<2x8xi32> to vector<2x8xf32>
    %136 = vector.broadcast %131 : vector<2x1xf32> to vector<2x8xf32>
    %137 = arith.mulf %136, %135 : vector<2x8xf32>
    %138 = arith.addf %94, %137 : vector<2x8xf32>
    %c9 = arith.constant 9 : index
    %139 = memref.load %arg1[%c9] : memref<24xi32, #tpu.memory_space<smem>>
    %c10 = arith.constant 10 : index
    %140 = memref.load %arg1[%c10] : memref<24xi32, #tpu.memory_space<smem>>
    %c11 = arith.constant 11 : index
    %141 = memref.load %arg1[%c11] : memref<24xi32, #tpu.memory_space<smem>>
    %c6_35 = arith.constant 6 : index
    %142 = memref.load %arg4[%c6_35] : memref<16xf32, #tpu.memory_space<smem>>
    %c7_36 = arith.constant 7 : index
    %143 = memref.load %arg4[%c7_36] : memref<16xf32, #tpu.memory_space<smem>>
    %144 = vector.broadcast %139 : i32 to vector<2x76xi32>
    %145 = arith.cmpi eq, %3, %144 : vector<2x76xi32>
    %cst_37 = arith.constant 0.000000e+00 : f32
    %146 = vector.broadcast %cst_37 : f32 to vector<2x76xf32>
    %147 = arith.select %145, %0, %146 : vector<2x76xi1>, vector<2x76xf32>
    %cst_38 = arith.constant dense<0.000000e+00> : vector<2xf32>
    %148 = vector.multi_reduction <add>, %147, %cst_38 [1] : vector<2x76xf32> to vector<2xf32>
    %149 = vector.shape_cast %148 : vector<2xf32> to vector<2x1xf32>
    %150 = vector.broadcast %140 : i32 to vector<2x32xi32>
    %151 = arith.cmpi eq, %4, %150 : vector<2x32xi32>
    %cst_39 = arith.constant 0.000000e+00 : f32
    %152 = vector.broadcast %cst_39 : f32 to vector<2x32xf32>
    %153 = arith.select %151, %2, %152 : vector<2x32xi1>, vector<2x32xf32>
    %cst_40 = arith.constant dense<0.000000e+00> : vector<2xf32>
    %154 = vector.multi_reduction <add>, %153, %cst_40 [1] : vector<2x32xf32> to vector<2xf32>
    %155 = vector.shape_cast %154 : vector<2xf32> to vector<2x1xf32>
    %156 = vector.broadcast %141 : i32 to vector<2x32xi32>
    %157 = arith.cmpi eq, %4, %156 : vector<2x32xi32>
    %cst_41 = arith.constant 0.000000e+00 : f32
    %158 = vector.broadcast %cst_41 : f32 to vector<2x32xf32>
    %159 = arith.select %157, %2, %158 : vector<2x32xi1>, vector<2x32xf32>
    %cst_42 = arith.constant dense<0.000000e+00> : vector<2xf32>
    %160 = vector.multi_reduction <add>, %159, %cst_42 [1] : vector<2x32xf32> to vector<2xf32>
    %161 = vector.shape_cast %160 : vector<2xf32> to vector<2x1xf32>
    %162 = arith.addf %155, %161 : vector<2x1xf32>
    %163 = vector.broadcast %143 : f32 to vector<2x1xf32>
    %164 = arith.addf %162, %163 : vector<2x1xf32>
    %165 = arith.negf %164 : vector<2x1xf32>
    %166 = math.exp %165 : vector<2x1xf32>
    %cst_43 = arith.constant 1.000000e+00 : f32
    %167 = vector.broadcast %cst_43 : f32 to vector<2x1xf32>
    %168 = arith.addf %167, %166 : vector<2x1xf32>
    %169 = arith.divf %167, %168 : vector<2x1xf32>
    %170 = vector.broadcast %142 : f32 to vector<2x1xf32>
    %171 = arith.mulf %170, %149 : vector<2x1xf32>
    %cst_44 = arith.constant 1.000000e+00 : f32
    %172 = arith.subf %cst_44, %142 : f32
    %173 = vector.broadcast %172 : f32 to vector<2x1xf32>
    %174 = arith.mulf %173, %169 : vector<2x1xf32>
    %175 = arith.addf %171, %174 : vector<2x1xf32>
    %c3_i32 = arith.constant 3 : i32
    %176 = vector.broadcast %c3_i32 : i32 to vector<2x8xi32>
    %177 = arith.cmpi eq, %5, %176 : vector<2x8xi32>
    %178 = arith.extui %177 : vector<2x8xi1> to vector<2x8xi32>
    %179 = arith.sitofp %178 : vector<2x8xi32> to vector<2x8xf32>
    %180 = vector.broadcast %175 : vector<2x1xf32> to vector<2x8xf32>
    %181 = arith.mulf %180, %179 : vector<2x8xf32>
    %182 = arith.addf %138, %181 : vector<2x8xf32>
    %c12 = arith.constant 12 : index
    %183 = memref.load %arg1[%c12] : memref<24xi32, #tpu.memory_space<smem>>
    %c13 = arith.constant 13 : index
    %184 = memref.load %arg1[%c13] : memref<24xi32, #tpu.memory_space<smem>>
    %c14 = arith.constant 14 : index
    %185 = memref.load %arg1[%c14] : memref<24xi32, #tpu.memory_space<smem>>
    %c8_45 = arith.constant 8 : index
    %186 = memref.load %arg4[%c8_45] : memref<16xf32, #tpu.memory_space<smem>>
    %c9_46 = arith.constant 9 : index
    %187 = memref.load %arg4[%c9_46] : memref<16xf32, #tpu.memory_space<smem>>
    %188 = vector.broadcast %183 : i32 to vector<2x76xi32>
    %189 = arith.cmpi eq, %3, %188 : vector<2x76xi32>
    %cst_47 = arith.constant 0.000000e+00 : f32
    %190 = vector.broadcast %cst_47 : f32 to vector<2x76xf32>
    %191 = arith.select %189, %0, %190 : vector<2x76xi1>, vector<2x76xf32>
    %cst_48 = arith.constant dense<0.000000e+00> : vector<2xf32>
    %192 = vector.multi_reduction <add>, %191, %cst_48 [1] : vector<2x76xf32> to vector<2xf32>
    %193 = vector.shape_cast %192 : vector<2xf32> to vector<2x1xf32>
    %194 = vector.broadcast %184 : i32 to vector<2x32xi32>
    %195 = arith.cmpi eq, %4, %194 : vector<2x32xi32>
    %cst_49 = arith.constant 0.000000e+00 : f32
    %196 = vector.broadcast %cst_49 : f32 to vector<2x32xf32>
    %197 = arith.select %195, %2, %196 : vector<2x32xi1>, vector<2x32xf32>
    %cst_50 = arith.constant dense<0.000000e+00> : vector<2xf32>
    %198 = vector.multi_reduction <add>, %197, %cst_50 [1] : vector<2x32xf32> to vector<2xf32>
    %199 = vector.shape_cast %198 : vector<2xf32> to vector<2x1xf32>
    %200 = vector.broadcast %185 : i32 to vector<2x32xi32>
    %201 = arith.cmpi eq, %4, %200 : vector<2x32xi32>
    %cst_51 = arith.constant 0.000000e+00 : f32
    %202 = vector.broadcast %cst_51 : f32 to vector<2x32xf32>
    %203 = arith.select %201, %2, %202 : vector<2x32xi1>, vector<2x32xf32>
    %cst_52 = arith.constant dense<0.000000e+00> : vector<2xf32>
    %204 = vector.multi_reduction <add>, %203, %cst_52 [1] : vector<2x32xf32> to vector<2xf32>
    %205 = vector.shape_cast %204 : vector<2xf32> to vector<2x1xf32>
    %206 = arith.addf %199, %205 : vector<2x1xf32>
    %207 = vector.broadcast %187 : f32 to vector<2x1xf32>
    %208 = arith.addf %206, %207 : vector<2x1xf32>
    %209 = arith.negf %208 : vector<2x1xf32>
    %210 = math.exp %209 : vector<2x1xf32>
    %cst_53 = arith.constant 1.000000e+00 : f32
    %211 = vector.broadcast %cst_53 : f32 to vector<2x1xf32>
    %212 = arith.addf %211, %210 : vector<2x1xf32>
    %213 = arith.divf %211, %212 : vector<2x1xf32>
    %214 = vector.broadcast %186 : f32 to vector<2x1xf32>
    %215 = arith.mulf %214, %193 : vector<2x1xf32>
    %cst_54 = arith.constant 1.000000e+00 : f32
    %216 = arith.subf %cst_54, %186 : f32
    %217 = vector.broadcast %216 : f32 to vector<2x1xf32>
    %218 = arith.mulf %217, %213 : vector<2x1xf32>
    %219 = arith.addf %215, %218 : vector<2x1xf32>
    %c4_i32 = arith.constant 4 : i32
    %220 = vector.broadcast %c4_i32 : i32 to vector<2x8xi32>
    %221 = arith.cmpi eq, %5, %220 : vector<2x8xi32>
    %222 = arith.extui %221 : vector<2x8xi1> to vector<2x8xi32>
    %223 = arith.sitofp %222 : vector<2x8xi32> to vector<2x8xf32>
    %224 = vector.broadcast %219 : vector<2x1xf32> to vector<2x8xf32>
    %225 = arith.mulf %224, %223 : vector<2x8xf32>
    %226 = arith.addf %182, %225 : vector<2x8xf32>
    %c15 = arith.constant 15 : index
    %227 = memref.load %arg1[%c15] : memref<24xi32, #tpu.memory_space<smem>>
    %c16 = arith.constant 16 : index
    %228 = memref.load %arg1[%c16] : memref<24xi32, #tpu.memory_space<smem>>
    %c17 = arith.constant 17 : index
    %229 = memref.load %arg1[%c17] : memref<24xi32, #tpu.memory_space<smem>>
    %c10_55 = arith.constant 10 : index
    %230 = memref.load %arg4[%c10_55] : memref<16xf32, #tpu.memory_space<smem>>
    %c11_56 = arith.constant 11 : index
    %231 = memref.load %arg4[%c11_56] : memref<16xf32, #tpu.memory_space<smem>>
    %232 = vector.broadcast %227 : i32 to vector<2x76xi32>
    %233 = arith.cmpi eq, %3, %232 : vector<2x76xi32>
    %cst_57 = arith.constant 0.000000e+00 : f32
    %234 = vector.broadcast %cst_57 : f32 to vector<2x76xf32>
    %235 = arith.select %233, %0, %234 : vector<2x76xi1>, vector<2x76xf32>
    %cst_58 = arith.constant dense<0.000000e+00> : vector<2xf32>
    %236 = vector.multi_reduction <add>, %235, %cst_58 [1] : vector<2x76xf32> to vector<2xf32>
    %237 = vector.shape_cast %236 : vector<2xf32> to vector<2x1xf32>
    %238 = vector.broadcast %228 : i32 to vector<2x32xi32>
    %239 = arith.cmpi eq, %4, %238 : vector<2x32xi32>
    %cst_59 = arith.constant 0.000000e+00 : f32
    %240 = vector.broadcast %cst_59 : f32 to vector<2x32xf32>
    %241 = arith.select %239, %2, %240 : vector<2x32xi1>, vector<2x32xf32>
    %cst_60 = arith.constant dense<0.000000e+00> : vector<2xf32>
    %242 = vector.multi_reduction <add>, %241, %cst_60 [1] : vector<2x32xf32> to vector<2xf32>
    %243 = vector.shape_cast %242 : vector<2xf32> to vector<2x1xf32>
    %244 = vector.broadcast %229 : i32 to vector<2x32xi32>
    %245 = arith.cmpi eq, %4, %244 : vector<2x32xi32>
    %cst_61 = arith.constant 0.000000e+00 : f32
    %246 = vector.broadcast %cst_61 : f32 to vector<2x32xf32>
    %247 = arith.select %245, %2, %246 : vector<2x32xi1>, vector<2x32xf32>
    %cst_62 = arith.constant dense<0.000000e+00> : vector<2xf32>
    %248 = vector.multi_reduction <add>, %247, %cst_62 [1] : vector<2x32xf32> to vector<2xf32>
    %249 = vector.shape_cast %248 : vector<2xf32> to vector<2x1xf32>
    %250 = arith.addf %243, %249 : vector<2x1xf32>
    %251 = vector.broadcast %231 : f32 to vector<2x1xf32>
    %252 = arith.addf %250, %251 : vector<2x1xf32>
    %253 = arith.negf %252 : vector<2x1xf32>
    %254 = math.exp %253 : vector<2x1xf32>
    %cst_63 = arith.constant 1.000000e+00 : f32
    %255 = vector.broadcast %cst_63 : f32 to vector<2x1xf32>
    %256 = arith.addf %255, %254 : vector<2x1xf32>
    %257 = arith.divf %255, %256 : vector<2x1xf32>
    %258 = vector.broadcast %230 : f32 to vector<2x1xf32>
    %259 = arith.mulf %258, %237 : vector<2x1xf32>
    %cst_64 = arith.constant 1.000000e+00 : f32
    %260 = arith.subf %cst_64, %230 : f32
    %261 = vector.broadcast %260 : f32 to vector<2x1xf32>
    %262 = arith.mulf %261, %257 : vector<2x1xf32>
    %263 = arith.addf %259, %262 : vector<2x1xf32>
    %c5_i32 = arith.constant 5 : i32
    %264 = vector.broadcast %c5_i32 : i32 to vector<2x8xi32>
    %265 = arith.cmpi eq, %5, %264 : vector<2x8xi32>
    %266 = arith.extui %265 : vector<2x8xi1> to vector<2x8xi32>
    %267 = arith.sitofp %266 : vector<2x8xi32> to vector<2x8xf32>
    %268 = vector.broadcast %263 : vector<2x1xf32> to vector<2x8xf32>
    %269 = arith.mulf %268, %267 : vector<2x8xf32>
    %270 = arith.addf %226, %269 : vector<2x8xf32>
    %c18 = arith.constant 18 : index
    %271 = memref.load %arg1[%c18] : memref<24xi32, #tpu.memory_space<smem>>
    %c19 = arith.constant 19 : index
    %272 = memref.load %arg1[%c19] : memref<24xi32, #tpu.memory_space<smem>>
    %c20 = arith.constant 20 : index
    %273 = memref.load %arg1[%c20] : memref<24xi32, #tpu.memory_space<smem>>
    %c12_65 = arith.constant 12 : index
    %274 = memref.load %arg4[%c12_65] : memref<16xf32, #tpu.memory_space<smem>>
    %c13_66 = arith.constant 13 : index
    %275 = memref.load %arg4[%c13_66] : memref<16xf32, #tpu.memory_space<smem>>
    %276 = vector.broadcast %271 : i32 to vector<2x76xi32>
    %277 = arith.cmpi eq, %3, %276 : vector<2x76xi32>
    %cst_67 = arith.constant 0.000000e+00 : f32
    %278 = vector.broadcast %cst_67 : f32 to vector<2x76xf32>
    %279 = arith.select %277, %0, %278 : vector<2x76xi1>, vector<2x76xf32>
    %cst_68 = arith.constant dense<0.000000e+00> : vector<2xf32>
    %280 = vector.multi_reduction <add>, %279, %cst_68 [1] : vector<2x76xf32> to vector<2xf32>
    %281 = vector.shape_cast %280 : vector<2xf32> to vector<2x1xf32>
    %282 = vector.broadcast %272 : i32 to vector<2x32xi32>
    %283 = arith.cmpi eq, %4, %282 : vector<2x32xi32>
    %cst_69 = arith.constant 0.000000e+00 : f32
    %284 = vector.broadcast %cst_69 : f32 to vector<2x32xf32>
    %285 = arith.select %283, %2, %284 : vector<2x32xi1>, vector<2x32xf32>
    %cst_70 = arith.constant dense<0.000000e+00> : vector<2xf32>
    %286 = vector.multi_reduction <add>, %285, %cst_70 [1] : vector<2x32xf32> to vector<2xf32>
    %287 = vector.shape_cast %286 : vector<2xf32> to vector<2x1xf32>
    %288 = vector.broadcast %273 : i32 to vector<2x32xi32>
    %289 = arith.cmpi eq, %4, %288 : vector<2x32xi32>
    %cst_71 = arith.constant 0.000000e+00 : f32
    %290 = vector.broadcast %cst_71 : f32 to vector<2x32xf32>
    %291 = arith.select %289, %2, %290 : vector<2x32xi1>, vector<2x32xf32>
    %cst_72 = arith.constant dense<0.000000e+00> : vector<2xf32>
    %292 = vector.multi_reduction <add>, %291, %cst_72 [1] : vector<2x32xf32> to vector<2xf32>
    %293 = vector.shape_cast %292 : vector<2xf32> to vector<2x1xf32>
    %294 = arith.addf %287, %293 : vector<2x1xf32>
    %295 = vector.broadcast %275 : f32 to vector<2x1xf32>
    %296 = arith.addf %294, %295 : vector<2x1xf32>
    %297 = arith.negf %296 : vector<2x1xf32>
    %298 = math.exp %297 : vector<2x1xf32>
    %cst_73 = arith.constant 1.000000e+00 : f32
    %299 = vector.broadcast %cst_73 : f32 to vector<2x1xf32>
    %300 = arith.addf %299, %298 : vector<2x1xf32>
    %301 = arith.divf %299, %300 : vector<2x1xf32>
    %302 = vector.broadcast %274 : f32 to vector<2x1xf32>
    %303 = arith.mulf %302, %281 : vector<2x1xf32>
    %cst_74 = arith.constant 1.000000e+00 : f32
    %304 = arith.subf %cst_74, %274 : f32
    %305 = vector.broadcast %304 : f32 to vector<2x1xf32>
    %306 = arith.mulf %305, %301 : vector<2x1xf32>
    %307 = arith.addf %303, %306 : vector<2x1xf32>
    %c6_i32 = arith.constant 6 : i32
    %308 = vector.broadcast %c6_i32 : i32 to vector<2x8xi32>
    %309 = arith.cmpi eq, %5, %308 : vector<2x8xi32>
    %310 = arith.extui %309 : vector<2x8xi1> to vector<2x8xi32>
    %311 = arith.sitofp %310 : vector<2x8xi32> to vector<2x8xf32>
    %312 = vector.broadcast %307 : vector<2x1xf32> to vector<2x8xf32>
    %313 = arith.mulf %312, %311 : vector<2x8xf32>
    %314 = arith.addf %270, %313 : vector<2x8xf32>
    %c21 = arith.constant 21 : index
    %315 = memref.load %arg1[%c21] : memref<24xi32, #tpu.memory_space<smem>>
    %c22 = arith.constant 22 : index
    %316 = memref.load %arg1[%c22] : memref<24xi32, #tpu.memory_space<smem>>
    %c23 = arith.constant 23 : index
    %317 = memref.load %arg1[%c23] : memref<24xi32, #tpu.memory_space<smem>>
    %c14_75 = arith.constant 14 : index
    %318 = memref.load %arg4[%c14_75] : memref<16xf32, #tpu.memory_space<smem>>
    %c15_76 = arith.constant 15 : index
    %319 = memref.load %arg4[%c15_76] : memref<16xf32, #tpu.memory_space<smem>>
    %320 = vector.broadcast %315 : i32 to vector<2x76xi32>
    %321 = arith.cmpi eq, %3, %320 : vector<2x76xi32>
    %cst_77 = arith.constant 0.000000e+00 : f32
    %322 = vector.broadcast %cst_77 : f32 to vector<2x76xf32>
    %323 = arith.select %321, %0, %322 : vector<2x76xi1>, vector<2x76xf32>
    %cst_78 = arith.constant dense<0.000000e+00> : vector<2xf32>
    %324 = vector.multi_reduction <add>, %323, %cst_78 [1] : vector<2x76xf32> to vector<2xf32>
    %325 = vector.shape_cast %324 : vector<2xf32> to vector<2x1xf32>
    %326 = vector.broadcast %316 : i32 to vector<2x32xi32>
    %327 = arith.cmpi eq, %4, %326 : vector<2x32xi32>
    %cst_79 = arith.constant 0.000000e+00 : f32
    %328 = vector.broadcast %cst_79 : f32 to vector<2x32xf32>
    %329 = arith.select %327, %2, %328 : vector<2x32xi1>, vector<2x32xf32>
    %cst_80 = arith.constant dense<0.000000e+00> : vector<2xf32>
    %330 = vector.multi_reduction <add>, %329, %cst_80 [1] : vector<2x32xf32> to vector<2xf32>
    %331 = vector.shape_cast %330 : vector<2xf32> to vector<2x1xf32>
    %332 = vector.broadcast %317 : i32 to vector<2x32xi32>
    %333 = arith.cmpi eq, %4, %332 : vector<2x32xi32>
    %cst_81 = arith.constant 0.000000e+00 : f32
    %334 = vector.broadcast %cst_81 : f32 to vector<2x32xf32>
    %335 = arith.select %333, %2, %334 : vector<2x32xi1>, vector<2x32xf32>
    %cst_82 = arith.constant dense<0.000000e+00> : vector<2xf32>
    %336 = vector.multi_reduction <add>, %335, %cst_82 [1] : vector<2x32xf32> to vector<2xf32>
    %337 = vector.shape_cast %336 : vector<2xf32> to vector<2x1xf32>
    %338 = arith.addf %331, %337 : vector<2x1xf32>
    %339 = vector.broadcast %319 : f32 to vector<2x1xf32>
    %340 = arith.addf %338, %339 : vector<2x1xf32>
    %341 = arith.negf %340 : vector<2x1xf32>
    %342 = math.exp %341 : vector<2x1xf32>
    %cst_83 = arith.constant 1.000000e+00 : f32
    %343 = vector.broadcast %cst_83 : f32 to vector<2x1xf32>
    %344 = arith.addf %343, %342 : vector<2x1xf32>
    %345 = arith.divf %343, %344 : vector<2x1xf32>
    %346 = vector.broadcast %318 : f32 to vector<2x1xf32>
    %347 = arith.mulf %346, %325 : vector<2x1xf32>
    %cst_84 = arith.constant 1.000000e+00 : f32
    %348 = arith.subf %cst_84, %318 : f32
    %349 = vector.broadcast %348 : f32 to vector<2x1xf32>
    %350 = arith.mulf %349, %345 : vector<2x1xf32>
    %351 = arith.addf %347, %350 : vector<2x1xf32>
    %c7_i32 = arith.constant 7 : i32
    %352 = vector.broadcast %c7_i32 : i32 to vector<2x8xi32>
    %353 = arith.cmpi eq, %5, %352 : vector<2x8xi32>
    %354 = arith.extui %353 : vector<2x8xi1> to vector<2x8xi32>
    %355 = arith.sitofp %354 : vector<2x8xi32> to vector<2x8xf32>
    %356 = vector.broadcast %351 : vector<2x1xf32> to vector<2x8xf32>
    %357 = arith.mulf %356, %355 : vector<2x8xf32>
    %358 = arith.addf %314, %357 : vector<2x8xf32>
    %c0_85 = arith.constant 0 : index
    %c0_86 = arith.constant 0 : index
    %359 = vector.load %arg5[%c0_85, %c0_86] : memref<2x8xf32, #tpu.memory_space<vmem>>, vector<2x8xf32>
    tpu.vector_store %arg5[%c0_85, %c0_86], %358 {strides = array<i32>} : memref<2x8xf32, #tpu.memory_space<vmem>>, vector<2x8xf32>,
    return
  }
  func.func @transform_0(%arg0: i32, %arg1: memref<24xi32, #tpu.memory_space<smem>>) -> (i32, i32) {
    %c0_i32 = arith.constant 0 : i32
    %c0_i32_0 = arith.constant 0 : i32
    %c0_i32_1 = arith.constant 0 : i32
    return %c0_i32, %c0_i32_0 : i32, i32
  }
  func.func @transform_1(%arg0: i32, %arg1: memref<24xi32, #tpu.memory_space<smem>>) -> (i32, i32) {
    %c0_i32 = arith.constant 0 : i32
    %c0_i32_0 = arith.constant 0 : i32
    %c0_i32_1 = arith.constant 0 : i32
    return %c0_i32, %c0_i32_0 : i32, i32
  }
  func.func @transform_2(%arg0: i32, %arg1: memref<24xi32, #tpu.memory_space<smem>>) -> i32 {
    %c0_i32 = arith.constant 0 : i32
    %c0_i32_0 = arith.constant 0 : i32
    return %c0_i32 : i32
  }
  func.func @transform_3(%arg0: i32, %arg1: memref<24xi32, #tpu.memory_space<smem>>) -> (i32, i32) {
    %c0_i32 = arith.constant 0 : i32
    %c0_i32_0 = arith.constant 0 : i32
    %c0_i32_1 = arith.constant 0 : i32
    return %c0_i32, %c0_i32_0 : i32, i32
  }
}

</mosaic_0001>

<bundles_post_ra>
// kernel: tpu_custom_call.1
= control target key start
LH: loop header
LB: loop body
LE: loop exit
PB: predicated region body
PF: predicated region fallthrough
CT: control target
= control target key end

     0   :  { %s1041_s0 = inlined_call_operand.vmem [shape: s32[24], index: 0, kind: input, shape index: {}]   ;;  %s1042_s1 = inlined_call_operand.vmem [shape: f32[2,76], index: 1, kind: input, shape index: {}]   ;;  %s1043_s2 = inlined_call_operand.vmem [shape: f32[76,32], index: 2, kind: input, shape index: {}]   ;;  %s1044_s3 = inlined_call_operand.vmem [shape: f32[16], index: 3, kind: input, shape index: {}]   ;;  %s1045_s4 = inlined_call_operand.hbm [shape: f32[2,8], index: 4, kind: output, shape index: {}]  }
   0x1   :  { %s9_s17 = sshll.u32 %s1041_s0, 4  ;;  %s10_s17 = int_to_ptr.vmem [resolvable:$true] %s9_s17 }
   0x2   :  { %s616_s18 = scalar_lea.vmem %s10_s17, 16  ;;  %p621_p1 = scmp.lt.s32.totalorder %s10_s17, %s10_s17 }
   0x3   :  { %p617_p0 = scmp.ne.s32.totalorder %s10_s17, %s616_s18  ;;  %p622_p2 = scmp.lt.s32.totalorder %s616_s18, %s616_s18 }
   0x5   :  { %p623_p3 = por %p622_p2, %p621_p1 }
   0x7   :  { %p624_p4 = pnand %p623_p3, %p617_p0 }
   0x9   :  { %627 = shalt.err (!%p624_p4)  }
   0xa   :  { %s666_s19 = smov [#allocation3]  }
   0xb   :  { %12 = dma.vmem_to_smem %s10_s17, 16, %s666_s19, [#allocation2] }
   0xc   :  { %660 = dma.done.wait [#allocation2], 16 }
   0xd   :  { %661 = vsyncadd [#allocation2], 4294967280 }
   0xe   :  { %14 = sfence }
   0xf   :  { %15 = vsyncpa [#allocation6], 0 }
  0x10   :  { %16 = vsyncpa [#allocation5], 0  ;;  %s27_s22 = sshll.u32 %s1044_s3, 4  ;;  %s28_s22 = int_to_ptr.vmem [resolvable:$true] %s27_s22 }
  0x11   :  { %s628_s0 = scalar_lea.vmem %s28_s22, 16  ;;  %p633_p6 = scmp.lt.s32.totalorder %s28_s22, %s28_s22 }
  0x12   :  { %p629_p5 = scmp.ne.s32.totalorder %s28_s22, %s628_s0  ;;  %p634_p7 = scmp.lt.s32.totalorder %s628_s0, %s628_s0 }
  0x14   :  { %p635_p8 = por %p634_p7, %p633_p6 }
  0x16   :  { %p636_p9 = pnand %p635_p8, %p629_p5 }
  0x18   :  { %639 = shalt.err (!%p636_p9)
}
  0x19   :  { %s667_s23 = smov [#allocation4]  }
  0x1a   :  { %30 = dma.vmem_to_smem %s28_s22, 16, %s667_s23, [#allocation6]  }
  0x1b   :  { %662 = dma.done.wait [#allocation6], 16  }
  0x1c   :  { %663 = vsyncadd [#allocation6], 4294967280 }
  0x1d   :  { %34 = sfence }
  0x1e   :  { %v45_v0 = vld [vmem:[%s1043_s2 + $0x48] sm:$0xf]  ;;  %vm50_vm0 = vcmask 1043456   ;;  %v668_v1 = vmov 0.0   ;;  %v44_v2 = vld [vmem:[%s1043_s2 + $0x40] sm:$0xff]  ;;  %vm669_vm1 = vmmov 0   ;;  %v124_v12 = vlaneseq }
  0x1f   :  { %556 = vmatprep.subr.mxu0 %v668_v1  ;;  %576 = vmatprep.mubr.msk.f32.mxu0 %vm669_vm1, %v668_v1  ;;  %v43_v3 = vld [vmem:[%s1043_s2 + $0x38] sm:$0xff]  ;;  %v42_v4 = vld [vmem:[%s1043_s2 + $0x30] sm:$0xff]  ;;  %v41_v5 = vld [vmem:[%s1043_s2 + $0x28] sm:$0xff]  ;;  %vm46_vm2 = vcmask 621568   ;;  %s497_s19 = sld [smem:[#allocation3 + $0x4]]  ;;  %vm141_vm5 = vcmask 254976  }
  0x20   :  { %557 = vmatpush3.msk.msra.mxu0 %vm50_vm0, %v45_v0  ;;  %v40_v6 = vld [vmem:[%s1043_s2 + $0x20] sm:$0xff]  ;;  %v39_v7 = vld [vmem:[%s1043_s2 + $0x18] sm:$0xff]  ;;  %v38_v8 = vld [vmem:[%s1043_s2 + $0x10] sm:$0xff]  ;;  %s491_s20 = sld [smem:[#allocation3 + $0x1]]  ;;  %v749_v13 = vand.u32 127, %v124_v12 }
  0x21   :  { %558 = vmatprep.subr.mxu0 %v668_v1  ;;  %v37_v9 = vld [vmem:[%s1043_s2 + $0x8] sm:$0xff]  ;;  %v36_v10 = vld [vmem:[%s1043_s2] sm:$0xff]  ;;  %s498_s21 = sld [smem:[#allocation3 + $0x5]] }
  0x22   :  { %559 = vmatpush3.msra.mxu0 %v44_v2  ;;  %v745_v11 = vld [vmem:[%s1042_s1] sm:$0x3]  ;;  %s492_s22 = sld [smem:[#allocation3 + $0x2]] }
  0x23   :  { %560 = vmatprep.subr.mxu0 %v668_v1  ;;  %s505_s0 = sld [smem:[#allocation3 + $0x8]] }
  0x24   :  { %561 = vmatpush3.msra.mxu0 %v43_v3  ;;  %s504_s23 = sld [smem:[#allocation3 + $0x7]] }
  0x25   :  { %562 = vmatprep.subr.mxu0 %v668_v1  ;;  %v182_v14 = vstv %s497_s19  ;;  %s751_s2 = sld [smem:[#allocation3 + $0xb]] }
  0x26   :  { %563 = vmatpush3.msra.mxu0 %v42_v4  ;;  %v138_v15 = vstv %s491_s20  ;;  %s753_s1 = sld [smem:[#allocation3 + $0xa]]  ;;  %vm183_vm3 = vcmp.eq.s32.totalorder %v749_v13, %v182_v14 }
  0x27   :  { %564 = vmatprep.subr.mxu0 %v668_v1  ;;  %v188_v16 = vstv %s498_s21  ;;  %vm139_vm4 = vcmp.eq.s32.totalorder %v749_v13, %v138_v15  ;;  %s769_s24 = sld [smem:[#allocation3 + $0xe]] }
  0x28   :  { %565 = vmatpush3.msra.mxu0 %v41_v5  ;;  %v145_v17 = vstv %s492_s22  ;;  %vm760_vm6 = vcmp.eq.s32.totalorder %v749_v13, %v188_v16  ;;  %s773_s25 = sld [smem:[#allocation3 + $0xd]] }
  0x29   :  { %566 = vmatprep.subr.mxu0 %v668_v1  ;;  %vm765_vm7 = vcmp.eq.s32.totalorder %v749_v13, %v145_v17  ;;  %v231_v23 = vstv %s505_s0  ;;  %s793_s3 = sld [smem:[#allocation3 + $0x11]] }
  0x2a   :  { %567 = vmatpush3.msra.mxu0 %v40_v6  ;;  %v225_v24 = vstv %s504_s23  ;;  %vm784_vm8 = vcmp.eq.s32.totalorder %v749_v13, %v231_v23  ;;  %s797_s26 = sld [smem:[#allocation3 + $0x10]] }
  0x2b   :  { %568 = vmatprep.subr.mxu0 %v668_v1  ;;  %vm789_vm9 = vcmp.eq.s32.totalorder %v749_v13, %v225_v24  ;;  %v274_v32 = vstv %s751_s2  ;;  %s817_s27 = sld [smem:[#allocation3 + $0x14]] }
  0x2c   :  { %569 = vmatpush3.msra.mxu0 %v39_v7  ;;  %v268_v33 = vstv %s753_s1  ;;  %vm808_vm10 = vcmp.eq.s32.totalorder %v749_v13, %v274_v32  ;;  %s821_s28 = sld [smem:[#allocation3 + $0x13]] }
  0x2d   :  { %570 = vmatprep.subr.mxu0 %v668_v1  ;;  %vm813_vm11 = vcmp.eq.s32.totalorder %v749_v13, %v268_v33  ;;  %v317_v40 = vstv %s769_s24  ;;  %s841_s29 = sld [smem:[#allocation3 + $0x17]] }
  0x2e   :  { %571 = vmatpush3.msra.mxu0 %v38_v8  ;;  %v311_v41 = vstv %s773_s25  ;;  %vm832_vm12 = vcmp.eq.s32.totalorder %v749_v13, %v317_v40  ;;  %s845_s30 = sld [smem:[#allocation3 + $0x16]] }
  0x2f   :  { %572 = vmatprep.subr.mxu0 %v668_v1  ;;  %vm837_vm13 = vcmp.eq.s32.totalorder %v749_v13, %v311_v41  ;;  %v360_v48 = vstv %s793_s3  ;;  %s849_s5 = sld [smem:[#allocation3 + $0x3]] }
  0x30   :  { %573 = vmatpush3.msra.mxu0 %v37_v9  ;;  %v354_v49 = vstv %s797_s26  ;;  %s857_s6 = sld [smem:[#allocation3]]  ;;  %vm860_vm14 = vcmp.eq.s32.totalorder %v749_v13, %v360_v48 }
  0x31   :  { %574 = vmatprep.subr.mxu0 %v668_v1  ;;  %vm865_vm15 = vcmp.eq.s32.totalorder %v749_v13, %v354_v49  ;;  %v403_v56 = vstv %s817_s27  ;;  %s873_s7 = sld [smem:[#allocation3 + $0x6]] }
  0x32   :  { %575 = vmatpush3.msra.mxu0 %v36_v10  ;;  %v397_v57 = vstv %s821_s28  ;;  %s881_s8 = sld [smem:[#allocation3 + $0x9]]  ;;  %vm884_vm0 = vcmp.eq.s32.totalorder %v749_v13, %v403_v56 }
  0x33   :  { %577 = vmatmul.mubr.msk.f32.vlgmr.msra.gmra.mxu0 %vm46_vm2, %v745_v11  ;;  %vm889_vm1 = vcmp.eq.s32.totalorder %v749_v13, %v397_v57  ;;  %v446_v0 = vstv %s841_s29  ;;  %s897_s9 = sld [smem:[#allocation3 + $0xc]] }
  0x34   :  { %v440_v2 = vstv %s845_s30  ;;  %s907_s10 = sld [smem:[#allocation3 + $0xf]]  ;;  %vm910_vm2 = vcmp.eq.s32.totalorder %v749_v13, %v446_v0 }
  0x35   :  { %v176_v7 = vstv %s849_s5  ;;  %s931_s11 = sld [smem:[#allocation3 + $0x12]] }
  0x36   :  { %v131_v8 = vstv %s857_s6  ;;  %s538_s12 = sld [smem:[#allocation3 + $0x15]] }
  0x37   :  { %v219_v20 = vstv %s873_s7  ;;  %s500_s13 = sld [smem:[#allocation4 + $0x3]]  ;;  %s670_s7 = smov [#allocation7]  }
  0x38   :  { %s493_s14 = sld [smem:[#allocation4 + $0x1]] }
  0x39   :  { %s507_s15 = sld [smem:[#allocation4 + $0x5]] }
  0x3a   :  { %s514_s16 = sld [smem:[#allocation4 + $0x7]] }
  0x3b   :  { %v391_v33 = vstv %s931_s11  ;;  %s521_s17 = sld [smem:[#allocation4 + $0x9]] }
  0x3c   :  { %s528_s18 = sld [smem:[#allocation4 + $0xb]] }
  0x3d   :  { %v195_v47 = vstv %s500_s13  ;;  %s535_s19 = sld [smem:[#allocation4 + $0xd]] }
  0x3e   :  { %v152_v49 = vstv %s493_s14  ;;  %s542_s20 = sld [smem:[#allocation4 + $0xf]] }
  0x3f   :  { %v238_v55 = vstv %s507_s15  ;;  %s984_s21 = sld [smem:[#allocation4 + $0x2]] }
  0x40   :  { %v281_v62 = vstv %s514_s16  ;;  %s986_s22 = sld [smem:[#allocation4]] }
  0x41   :  { %s988_s0 = sld [smem:[#allocation4 + $0x4]] }
  0x42   :  { %s990_s23 = sld [smem:[#allocation4 + $0x6]] }
  0x43   :  { %s992_s2 = sld [smem:[#allocation4 + $0x8]] }
  0x44   :  { %s998_s3 = sld [smem:[#allocation4 + $0xa]] }
  0x45   :  { %s205_s1 = ssub.f32 1.0, %s984_s21 }
  0x46   :  { %s162_s24 = ssub.f32 1.0, %s986_s22 }
  0x47   :  { %s248_s25 = ssub.f32 1.0, %s988_s0 }
  0x48   :  { %s291_s26 = ssub.f32 1.0, %s990_s23 }
  0x49   :  { %s334_s27 = ssub.f32 1.0, %s992_s2 }
  0x4a   :  { %s1005_s28 = sld [smem:[#allocation4 + $0xc]] }
  0x4b   :  { %s1011_s29 = sld [smem:[#allocation4 + $0xe]] }
  0x4c   :  { %s377_s30 = ssub.f32 1.0, %s998_s3 }
  0x50   :  { %s420_s5 = ssub.f32 1.0, %s1005_s28 }
  0x51   :  { %s463_s6 = ssub.f32 1.0, %s1011_s29 }
  0xf3   :  { %v757_v18 = vpop.f32.mrf.mxu0 }
  0xf4   :  { %v184_v21 = vsel %vm183_vm3, %v757_v18, 0.0  ;;  %v140_v22 = vsel %vm139_vm4, %v757_v18, 0.0  ;;  %v190_v28 = vsel %vm760_vm6, %v757_v18, 0.0  ;;  %v147_v29 = vsel %vm765_vm7, %v757_v18, 0.0 }
  0xf5   :  { %v578_v25 = vpop.f32.mrf.mxu0  ;;  %v185_v26 = vsel %vm141_vm5, %v184_v21, 0.0  ;;  %v142_v27 = vsel %vm141_vm5, %v140_v22, 0.0  ;;  %v191_v34 = vsel %vm141_vm5, %v190_v28, 0.0  ;;  %v148_v35 = vsel %vm141_vm5, %v147_v29, 0.0 }
  0xf6   :  { %186 = vadd.xlane.f32.xlu1 %v185_v26  ;;  %143 = vadd.xlane.f32.xlu0 %v142_v27  ;;  %v233_v36 = vsel %vm784_vm8, %v757_v18, 0.0  ;;  %v227_v37 = vsel %vm789_vm9, %v757_v18, 0.0  ;;  %v276_v44 = vsel %vm808_vm10, %v757_v18, 0.0  ;;  %v270_v45 = vsel %vm813_vm11, %v757_v18, 0.0 }
  0xf7   :  { %v234_v42 = vsel %vm141_vm5, %v233_v36, 0.0  ;;  %v228_v43 = vsel %vm141_vm5, %v227_v37, 0.0  ;;  %v277_v50 = vsel %vm141_vm5, %v276_v44, 0.0  ;;  %v271_v51 = vsel %vm141_vm5, %v270_v45, 0.0 }
  0xf8   :  { %v319_v52 = vsel %vm832_vm12, %v757_v18, 0.0  ;;  %v313_v53 = vsel %vm837_vm13, %v757_v18, 0.0  ;;  %v362_v60 = vsel %vm860_vm14, %v757_v18, 0.0  ;;  %v356_v61 = vsel %vm865_vm15, %v757_v18, 0.0 }
  0xf9   :  { %v320_v58 = vsel %vm141_vm5, %v319_v52, 0.0  ;;  %v314_v59 = vsel %vm141_vm5, %v313_v53, 0.0  ;;  %v363_v3 = vsel %vm141_vm5, %v362_v60, 0.0  ;;  %v357_v4 = vsel %vm141_vm5, %v356_v61, 0.0 }
  0xfa   :  { %192 = vadd.xlane.f32.xlu1 %v191_v34  ;;  %149 = vadd.xlane.f32.xlu0 %v148_v35  ;;  %v405_v5 = vsel %vm884_vm0, %v757_v18, 0.0  ;;  %v399_v6 = vsel %vm889_vm1, %v757_v18, 0.0  ;;  %vm915_vm3 = vcmp.eq.s32.totalorder %v749_v13, %v440_v2  ;;  %vm922_vm4 = vcmp.eq.s32.totalorder %v749_v13, %v176_v7 }
  0xfb   :  { %v406_v12 = vsel %vm141_vm5, %v405_v5, 0.0  ;;  %v400_v14 = vsel %vm141_vm5, %v399_v6, 0.0  ;;  %vm927_vm6 = vcmp.eq.s32.totalorder %v749_v13, %v131_v8  ;;  %v448_v17 = vsel %vm910_vm2, %v757_v18, 0.0 }
  0xfc   :  { %v442_v19 = vsel %vm915_vm3, %v757_v18, 0.0  ;;  %v262_v21 = vstv %s881_s8  ;;  %vm134_vm7 = vcmask 615424   ;;  %v178_v22 = vsel %vm922_vm4, %v745_v11, 0.0  ;;  %s480_s8 = sshll.u32 %s670_s7, 4  ;;  %s481_s8 = int_to_ptr.vmem [resolvable:$true] %s480_s8 }
  0xfd   :  { %v133_v23 = vsel %vm927_vm6, %v745_v11, 0.0  ;;  %v449_v24 = vsel %vm141_vm5, %v448_v17, 0.0  ;;  %v443_v25 = vsel %vm141_vm5, %v442_v19, 0.0  ;;  %vm950_vm8 = vcmp.eq.s32.totalorder %v749_v13, %v219_v20  ;;  %p645_p11 = scmp.lt.s32.totalorder %s481_s8, %s481_s8 }
  0xfe   :  { %235 = vadd.xlane.f32.xlu1 %v234_v42  ;;  %229 = vadd.xlane.f32.xlu0 %v228_v43  ;;  %vm955_vm9 = vcmp.eq.s32.totalorder %v749_v13, %v262_v21  ;;  %v305_v27 = vstv %s897_s9  ;;  %v348_v28 = vstv %s907_s10  ;;  %v179_v29 = vsel %vm134_vm7, %v178_v22, 0.0  ;;  %s640_s9 = scalar_lea.vmem %s481_s8, 32 }
  0xff   :  { %v135_v30 = vsel %vm134_vm7, %v133_v23, 0.0  ;;  %v221_v31 = vsel %vm950_vm8, %v745_v11, 0.0  ;;  %v264_v32 = vsel %vm955_vm9, %v745_v11, 0.0  ;;  %vm306_vm5 = vcmp.eq.s32.totalorder %v749_v13, %v305_v27  ;;  %p641_p10 = scmp.ne.s32.totalorder %s481_s8, %s640_s9  ;;  %p646_p12 = scmp.lt.s32.totalorder %s640_s9, %s640_s9 }
 0x100   :  { %vm349_vm10 = vcmp.eq.s32.totalorder %v749_v13, %v348_v28  ;;  %v434_v34 = vstv %s538_s12  ;;  %v222_v35 = vsel %vm134_vm7, %v221_v31, 0.0  ;;  %v265_v36 = vsel %vm134_vm7, %v264_v32, 0.0 }
 0x101   :  { %v307_v37 = vsel %vm306_vm5, %v745_v11, 0.0  ;;  %v350_v38 = vsel %vm349_vm10, %v745_v11, 0.0  ;;  %vm392_vm11 = vcmp.eq.s32.totalorder %v749_v13, %v391_v33  ;;  %vm435_vm12 = vcmp.eq.s32.totalorder %v749_v13, %v434_v34  ;;  %p647_p13 = por %p646_p12, %p645_p11 }
 0x102   :  { %278 = vadd.xlane.f32.xlu1 %v277_v50  ;;  %272 = vadd.xlane.f32.xlu0 %v271_v51  ;;  %v308_v39 = vsel %vm134_vm7, %v307_v37, 0.0  ;;  %v351_v40 = vsel %vm134_vm7, %v350_v38, 0.0  ;;  %v393_v41 = vsel %vm392_vm11, %v745_v11, 0.0  ;;  %v436_v42 = vsel %vm435_vm12, %v745_v11, 0.0 }
 0x103   :  { %v394_v43 = vsel %vm134_vm7, %v393_v41, 0.0  ;;  %v437_v44 = vsel %vm134_vm7, %v436_v42, 0.0  ;;  %v324_v5 = vstv %s521_s17  ;;  %v410_v21 = vstv %s535_s19  ;;  %p648_p0 = pnand %p647_p13, %p641_p10 }
 0x104   :  { %vm209_vm13 = vcmp.eq.s32.totalorder %v749_v13, 1  ;;  %vm166_vm14 = vcmp.eq.s32.totalorder %v749_v13, 0  ;;  %vm252_vm15 = vcmp.eq.s32.totalorder %v749_v13, 2  ;;  %vm295_vm0 = vcmp.eq.s32.totalorder %v749_v13, 3 }
 0x105   :  { %vm338_vm1 = vcmp.eq.s32.totalorder %v749_v13, 4  ;;  %vm381_vm2 = vcmp.eq.s32.totalorder %v749_v13, 5  ;;  %vm424_vm3 = vcmp.eq.s32.totalorder %v749_v13, 6  ;;  %vm467_vm4 = vcmp.eq.s32.totalorder %v749_v13, 7 }
 0x106   :  { %321 = vadd.xlane.f32.xlu1 %v320_v58  ;;  %315 = vadd.xlane.f32.xlu0 %v314_v59  ;;  %vm472_vm6 = vcmask 58368  }
 0x10a   :  { %364 = vadd.xlane.f32.xlu1 %v363_v3  ;;  %358 = vadd.xlane.f32.xlu0 %v357_v4 }
 0x10e   :  { %407 = vadd.xlane.f32.xlu1 %v406_v12  ;;  %401 = vadd.xlane.f32.xlu0 %v400_v14  ;;  %v367_v12 = vstv %s528_s18 }
 0x112   :  { %450 = vadd.xlane.f32.xlu1 %v449_v24  ;;  %444 = vadd.xlane.f32.xlu0 %v443_v25 }
 0x116   :  { %180 = vadd.xlane.f32.xlu1 %v179_v29  ;;  %136 = vadd.xlane.f32.xlu0 %v135_v30  ;;  %v453_v30 = vstv %s542_s20 }
 0x11a   :  { %223 = vadd.xlane.f32.xlu0 %v222_v35  ;;  %266 = vadd.xlane.f32.xlu1 %v265_v36 }
 0x11e   :  { %309 = vadd.xlane.f32.xlu0 %v308_v39  ;;  %352 = vadd.xlane.f32.xlu1 %v351_v40 }
 0x122   :  { %395 = vadd.xlane.f32.xlu0 %v394_v43  ;;  %438 = vadd.xlane.f32.xlu1 %v437_v44 }
 0x17f   :  { %v187_v45 = vpop.xlane.xlu1 %186  ;;  %v144_v46 = vpop.xlane.xlu0 %143 }
 0x183   :  { %v193_v48 = vpop.xlane.xlu1 %192  ;;  %v150_v50 = vpop.xlane.xlu0 %149 }
 0x184   :  { %v194_v51 = vadd.f32 %v193_v48, %v187_v45  ;;  %v151_v11 = vadd.f32 %v150_v50, %v144_v46  ;;  %v203_v46 = vstv %s984_s21  ;;  %v160_v50 = vstv %s986_s22 }
 0x186   :  { %v196_v52 = vadd.f32 %v195_v47, %v194_v51  ;;  %v153_v53 = vadd.f32 %v152_v49, %v151_v11  ;;  %v206_v49 = vstv %s205_s1  ;;  %v163_v51 = vstv %s162_s24 }
 0x187   :  { %v236_v54 = vpop.xlane.xlu1 %235  ;;  %v230_v56 = vpop.xlane.xlu0 %229 }
 0x188   :  { %v501_v57 = vmul.f32 -1.442695, %v196_v52  ;;  %v494_v58 = vmul.f32 -1.442695, %v153_v53  ;;  %v237_v59 = vadd.f32 %v236_v54, %v230_v56  ;;  %v246_v54 = vstv %s988_s0 }
 0x18a   :  { %584 = vpow2.f32 %v501_v57  ;;  %v239_v60 = vadd.f32 %v238_v55, %v237_v59  ;;  %v249_v55 = vstv %s248_s25  ;;  %v289_v57 = vstv %s990_s23 }
 0x18b   :  { %586 = vpow2.f32 %v494_v58  ;;  %v279_v61 = vpop.xlane.xlu1 %278  ;;  %v273_v63 = vpop.xlane.xlu0 %272 }
 0x18c   :  { %v508_v0 = vmul.f32 -1.442695, %v239_v60  ;;  %v280_v2 = vadd.f32 %v279_v61, %v273_v63 }
 0x18e   :  { %588 = vpow2.f32 %v508_v0  ;;  %v282_v3 = vadd.f32 %v281_v62, %v280_v2  ;;  %v292_v0 = vstv %s291_s26 }
 0x18f   :  { %v322_v4 = vpop.xlane.xlu1 %321  ;;  %v316_v6 = vpop.xlane.xlu0 %315 }
 0x190   :  { %v515_v7 = vmul.f32 -1.442695, %v282_v3  ;;  %v323_v8 = vadd.f32 %v322_v4, %v316_v6  ;;  %v332_v6 = vstv %s992_s2 }
 0x192   :  { %590 = vpow2.f32 %v515_v7  ;;  %v325_v9 = vadd.f32 %v324_v5, %v323_v8  ;;  %v335_v7 = vstv %s334_s27 }
 0x193   :  { %v365_v10 = vpop.xlane.xlu1 %364  ;;  %v359_v14 = vpop.xlane.xlu0 %358 }
 0x194   :  { %v522_v15 = vmul.f32 -1.442695, %v325_v9  ;;  %v366_v16 = vadd.f32 %v365_v10, %v359_v14 }
 0x196   :  { %592 = vpow2.f32 %v522_v15  ;;  %v368_v17 = vadd.f32 %v367_v12, %v366_v16  ;;  %v502_v15 = vsel %vm209_vm13, 1.0, %v668_v1  ;;  %v495_v16 = vsel %vm166_vm14, 1.0, %v668_v1 }
 0x197   :  { %v585_v19 = vpop.eup %584  ;;  %v408_v20 = vpop.xlane.xlu1 %407 }
 0x198   :  { %v402_v22 = vpop.xlane.xlu0 %401  ;;  %v587_v23 = vpop.eup %586  ;;  %v529_v24 = vmul.f32 -1.442695, %v368_v17  ;;  %v200_v18 = vadd.f32 1.0, %v585_v19 }
 0x199   :  { %v409_v25 = vadd.f32 %v408_v20, %v402_v22  ;;  %v157_v26 = vadd.f32 1.0, %v587_v23  ;;  %v509_v23 = vsel %vm252_vm15, 1.0, %v668_v1 }
 0x19a   :  { %594 = vpow2.f32 %v529_v24 }
 0x19b   :  { %v411_v27 = vadd.f32 %v410_v21, %v409_v25  ;;  %v589_v28 = vpop.eup %588  ;;  %v451_v29 = vpop.xlane.xlu1 %450  ;;  %596 = vrcp.f32 %v200_v18  ;;  %v375_v21 = vstv %s998_s3 }
 0x19c   :  { %v445_v31 = vpop.xlane.xlu0 %444  ;;  %v243_v34 = vadd.f32 1.0, %v589_v28  ;;  %598 = vrcp.f32 %v157_v26  ;;  %v378_v26 = vstv %s377_s30 }
 0x19d   :  { %v536_v32 = vmul.f32 -1.442695, %v411_v27  ;;  %v452_v33 = vadd.f32 %v451_v29, %v445_v31  ;;  %v516_v27 = vsel %vm295_vm0, 1.0, %v668_v1  ;;  %v418_v29 = vstv %s1005_s28 }
 0x19f   :  { %v454_v35 = vadd.f32 %v453_v30, %v452_v33  ;;  %v591_v36 = vpop.eup %590  ;;  %600 = vpow2.f32 %v536_v32  ;;  %v181_v47 = vpop.xlane.xlu1 %180 }
 0x1a0   :  { %v286_v37 = vadd.f32 1.0, %v591_v36  ;;  %602 = vrcp.f32 %v243_v34  ;;  %v137_v41 = vpop.xlane.xlu0 %136  ;;  %v204_v53 = vmul.f32 %v203_v46, %v181_v47  ;;  %v523_v34 = vsel %vm338_vm1, 1.0, %v668_v1 }
 0x1a1   :  { %v543_v38 = vmul.f32 -1.442695, %v454_v35  ;;  %v161_v61 = vmul.f32 %v160_v50, %v137_v41  ;;  %v421_v36 = vstv %s420_s5  ;;  %v530_v41 = vsel %vm381_vm2, 1.0, %v668_v1 }
 0x1a2   :  { %604 = vrcp.f32 %v286_v37 }
 0x1a3   :  { %v593_v39 = vpop.eup %592  ;;  %606 = vpow2.f32 %v543_v38  ;;  %v267_v62 = vpop.xlane.xlu1 %266 }
 0x1a4   :  { %v329_v40 = vadd.f32 1.0, %v593_v39  ;;  %v224_v56 = vpop.xlane.xlu0 %223  ;;  %v290_v5 = vmul.f32 %v289_v57, %v267_v62  ;;  %v544_v57 = vsel %vm467_vm4, 1.0, %v668_v1 }
 0x1a5   :  { %v247_v4 = vmul.f32 %v246_v54, %v224_v56 }
 0x1a6   :  { %608 = vrcp.f32 %v329_v40 }
 0x1a7   :  { %v595_v42 = vpop.eup %594  ;;  %v353_v22 = vpop.xlane.xlu1 %352 }
 0x1a8   :  { %v597_v43 = vpop.eup %596  ;;  %v372_v44 = vadd.f32 1.0, %v595_v42  ;;  %v310_v8 = vpop.xlane.xlu0 %309  ;;  %v376_v28 = vmul.f32 %v375_v21, %v353_v22 }
 0x1a9   :  { %v599_v45 = vpop.eup %598  ;;  %v207_v59 = vmul.f32 %v597_v43, %v206_v49  ;;  %v333_v20 = vmul.f32 %v332_v6, %v310_v8  ;;  %v461_v43 = vstv %s1011_s29  ;;  %v464_v49 = vstv %s463_s6 }
 0x1aa   :  { %610 = vrcp.f32 %v372_v44  ;;  %v164_v60 = vmul.f32 %v599_v45, %v163_v51 }
 0x1ab   :  { %v208_v10 = vadd.f32 %v207_v59, %v204_v53  ;;  %v439_v44 = vpop.xlane.xlu1 %438 }
 0x1ac   :  { %v601_v48 = vpop.eup %600  ;;  %v165_v12 = vadd.f32 %v164_v60, %v161_v61  ;;  %v396_v30 = vpop.xlane.xlu0 %395 }
 0x1ad   :  { %v415_v11 = vadd.f32 1.0, %v601_v48  ;;  %v603_v52 = vpop.eup %602  ;;  %v212_v24 = vmul.f32 %v502_v15, %v208_v10  ;;  %v419_v39 = vmul.f32 %v418_v29, %v396_v30  ;;  %v537_v48 = vsel %vm424_vm3, 1.0, %v668_v1 }
 0x1ae   :  { %v250_v3 = vmul.f32 %v603_v52, %v249_v55  ;;  %v169_v25 = vmul.f32 %v495_v16, %v165_v12  ;;  %v462_v52 = vmul.f32 %v461_v43, %v439_v44 }
 0x1af   :  { %v605_v58 = vpop.eup %604  ;;  %612 = vrcp.f32 %v415_v11 }
 0x1b0   :  { %v607_v63 = vpop.eup %606  ;;  %v293_v14 = vmul.f32 %v605_v58, %v292_v0  ;;  %v251_v17 = vadd.f32 %v250_v3, %v247_v4  ;;  %v213_v37 = vadd.f32 %v212_v24, %v169_v25 }
 0x1b1   :  { %v458_v2 = vadd.f32 1.0, %v607_v63 }
 0x1b2   :  { %v294_v18 = vadd.f32 %v293_v14, %v290_v5  ;;  %v255_v32 = vmul.f32 %v509_v23, %v251_v17 }
 0x1b3   :  { %v609_v9 = vpop.eup %608  ;;  %614 = vrcp.f32 %v458_v2 }
 0x1b4   :  { %v336_v19 = vmul.f32 %v609_v9, %v335_v7  ;;  %v298_v38 = vmul.f32 %v516_v27, %v294_v18  ;;  %v256_v45 = vadd.f32 %v255_v32, %v213_v37 }
 0x1b6   :  { %v337_v33 = vadd.f32 %v336_v19, %v333_v20  ;;  %v299_v50 = vadd.f32 %v298_v38, %v256_v45 }
 0x1b7   :  { %v611_v31 = vpop.eup %610 }
 0x1b8   :  { %v379_v35 = vmul.f32 %v611_v31, %v378_v26  ;;  %v341_v46 = vmul.f32 %v523_v34, %v337_v33 }
 0x1ba   :  { %v380_v42 = vadd.f32 %v379_v35, %v376_v28  ;;  %v342_v54 = vadd.f32 %v341_v46, %v299_v50 }
 0x1bc   :  { %v613_v40 = vpop.eup %612  ;;  %v384_v51 = vmul.f32 %v530_v41, %v380_v42 }
 0x1bd   :  { %v422_v47 = vmul.f32 %v613_v40, %v421_v36 }
 0x1be   :  { %v385_v59 = vadd.f32 %v384_v51, %v342_v54 }
 0x1bf   :  { %v423_v11 = vadd.f32 %v422_v47, %v419_v39 }
 0x1c0   :  { %v615_v53 = vpop.eup %614 }
 0x1c1   :  { %v427_v55 = vmul.f32 %v537_v48, %v423_v11  ;;  %v465_v56 = vmul.f32 %v615_v53, %v464_v49 }
 0x1c3   :  { %v466_v58 = vadd.f32 %v465_v56, %v462_v52  ;;  %v428_v60 = vadd.f32 %v427_v55, %v385_v59 }
 0x1c5   :  { %v470_v61 = vmul.f32 %v544_v57, %v466_v58 }
 0x1c7   :  { %v471_v62 = vadd.f32 %v470_v61, %v428_v60 }
 0x1c9   :  { %473 = vst.msk [vmem:[#allocation7] sm:$0x3] %vm472_vm6, %v471_v62 }
 0x1ca   :  { %651 = shalt.err (!%p648_p0)
}
 0x1cb   :  { %483 = dma.vmem_to_hbm [thread:$0]  %s481_s8, 32, %s1045_s4, [#allocation5]  }
 0x1cc   :  { %664 = dma.done.wait [#allocation5], 32  }
 0x1cd   :  { %665 = vsyncadd [#allocation5], 4294967264 }
 0x1ce   :  { %487 = vsyncpa [#allocation5], 1 }
 0x1cf   :  { %488 = vsyncpa [#allocation6], 1 }

</bundles_post_ra>
